<compile_context>
chip_gen: v7x
topology: tpu7x:2x2x1
jax: 0.10.0
libtpu: 0.0.40
codegen_flags: <defaults>
</compile_context>

<pallas_src>
import math

import jax
import jax.numpy as jnp
from jax.experimental import pallas as pl
from jax.experimental.pallas import tpu as pltpu


def _tsembed_kernel(ts_ref, fs_ref, w1c_ref, w1s_ref, b1_ref, w2_ref, b2_ref,
                    o_ref, cos_ref, sin_ref):
    k = pl.program_id(1)  # reduction axis over hidden columns (innermost)

    @pl.when(k == 0)
    def _():
        # Hoisted sinusoidal features: EUP transcendentals run once per output
        # column block and are reused for every k > 0 step.
        args = ts_ref[...] * fs_ref[...]                  # (N, mid) f32
        cos_ref[...] = jnp.cos(args)
        sin_ref[...] = jnp.sin(args)
        # Accumulate directly into the resident output block; seed with bias2.
        o_ref[...] = jnp.broadcast_to(b2_ref[...], o_ref.shape)

    # First Linear, restricted to this block of hidden columns.
    #   emb = [cos, sin]  =>  emb @ W1[:, blk] = cos @ W1[:mid, blk] + sin @ W1[mid:, blk]
    # (matches torch.cat([cos, sin], dim=-1) ordering without a lane concat).
    # LHS stays f32; bf16 weights are promoted inside the dot.
    h = (jnp.dot(cos_ref[...], w1c_ref[...], preferred_element_type=jnp.float32)
         + jnp.dot(sin_ref[...], w1s_ref[...], preferred_element_type=jnp.float32)
         + b1_ref[...])                                   # (N, tk) f32
    h = h * jax.nn.sigmoid(h)                             # SiLU

    # Second Linear: add this K-block's contribution to the output columns.
    o_ref[...] += jnp.dot(h.astype(w2_ref.dtype), w2_ref[...],
                          preferred_element_type=jnp.float32)


def _weight_tile_budget_bytes():
    """VMEM byte budget for the double-buffered per-step weight tiles."""
    try:
        cap = pltpu.get_tpu_info().vmem_capacity_bytes
    except Exception:  # interpret mode / older runtimes
        cap = 64 << 20
    # Stay inside the smallest default scoped-VMEM limit across generations
    # (v5e: 16 MiB) with headroom, and never above a quarter of physical VMEM
    # (v7x has only 64 MiB physical).
    return min(cap // 4, 12 << 20)


def _pick_tk(dim, budget_bytes):
    """Largest lane-dense (multiple-of-128) divisor of dim whose double-buffered
    weight footprint (~8*dim*tk bytes: bf16 W1 halves + bf16 W2 row block, x2
    pipeline buffers) fits the budget.  Collapses the reduction grid to a single
    step (tk = dim) whenever the whole weight set fits."""
    if dim % 128 != 0:
        # TODO(synk): very large dims that are not multiples of 128 fall back to
        # a single full-dim block and could exceed the scoped VMEM limit.
        return dim
    cands = [t for t in range(128, dim + 1, 128) if dim % t == 0]
    fits = [t for t in cands if 8 * dim * t <= budget_bytes]
    return fits[-1] if fits else cands[0]


def timestep_embedding(timesteps, params, *, dim, max_period=10000,
                       tk=None, tn=None):
    """timesteps: (N,) int/float array. Returns (N, dim) float32.

    tn: output-column block width ("parallel" grid axis).  Defaults to dim
    (single block).  On v7x, pass tn = dim // 2 at large dim so both
    TensorCores share the W2 stream.
    """
    assert dim % 2 == 0, "embedding dim must be even"
    mid = dim // 2
    N = timesteps.shape[0]

    if tk is None:
        tk = _pick_tk(dim, _weight_tile_budget_bytes())
    if tn is None:
        tn = dim
    assert dim % tk == 0 and dim % tn == 0
    n_k = dim // tk
    n_j = dim // tn

    # Frequencies (cheap glue, stays in JAX).
    fs = jnp.exp(-math.log(max_period) / mid *
                 jnp.arange(mid, dtype=jnp.float32)).reshape(1, mid)
    ts = timesteps.astype(jnp.float32).reshape(N, 1)

    w1, b1, w2, b2 = params
    # bf16 weights: the kernel is HBM-bound on weight reads; halve the bytes.
    w1c = w1[:mid].astype(jnp.bfloat16)   # rows multiplying cos(args)
    w1s = w1[mid:].astype(jnp.bfloat16)   # rows multiplying sin(args)
    w2b = w2.astype(jnp.bfloat16)
    b1 = b1.astype(jnp.float32)
    b2 = b2.astype(jnp.float32)

    cost = pl.CostEstimate(
        flops=4 * N * dim * dim,                    # two dim x dim matmuls
        transcendentals=2 * N * dim,                # cos + sin + sigmoid
        bytes_accessed=4 * dim * dim + 4 * N * dim + 8 * dim,
    )

    return pl.pallas_call(
        _tsembed_kernel,
        out_shape=jax.ShapeDtypeStruct((N, dim), jnp.float32),
        grid_spec=pltpu.PrefetchScalarGridSpec(
            num_scalar_prefetch=0,
            grid=(n_j, n_k),                                  # (out cols, reduction)
            in_specs=[
                pl.BlockSpec((N, 1), lambda j, k: (0, 0)),    # timesteps column
                pl.BlockSpec((1, mid), lambda j, k: (0, 0)),  # frequencies row
                pl.BlockSpec((mid, tk), lambda j, k: (0, k)), # W1 cos-half, col block
                pl.BlockSpec((mid, tk), lambda j, k: (0, k)), # W1 sin-half, col block
                pl.BlockSpec((1, tk), lambda j, k: (0, k)),   # b1 block
                pl.BlockSpec((tk, tn), lambda j, k: (k, j)),  # W2 tile
                pl.BlockSpec((1, tn), lambda j, k: (0, j)),   # b2 block
            ],
            out_specs=pl.BlockSpec((N, tn), lambda j, k: (0, j)),
            scratch_shapes=[pltpu.VMEM((N, mid), jnp.float32),   # cos(args)
                            pltpu.VMEM((N, mid), jnp.float32)],  # sin(args)
        ),
        compiler_params=pltpu.CompilerParams(
            dimension_semantics=("parallel", "arbitrary")),
        cost_estimate=cost,
    )(ts, fs, w1c, w1s, b1, w2b, b2)


def init_params(key, dim):
    """Deterministic synthetic init for fc = Linear(dim,dim) -> SiLU -> Linear(dim,dim).

    Weights are stored pre-transposed, i.e. applied as x @ W (PyTorch's x @ W^T).
    """
    k1, k2, k3, k4 = jax.random.split(key, 4)
    scale = 1.0 / math.sqrt(dim)
    w1 = jax.random.uniform(k1, (dim, dim), jnp.float32, -scale, scale)
    b1 = jax.random.uniform(k2, (1, dim), jnp.float32, -scale, scale)
    w2 = jax.random.uniform(k3, (dim, dim), jnp.float32, -scale, scale)
    b2 = jax.random.uniform(k4, (1, dim), jnp.float32, -scale, scale)
    return w1, b1, w2, b2


def _reference(timesteps, params, *, dim, max_period=10000):
    """Pure-JAX reference mirroring the PyTorch forward.  Only the weights are
    bf16-quantized (exactly what the kernel does); activations stay f32."""
    mid = dim // 2
    fs = jnp.exp(-math.log(max_period) / mid *
                 jnp.arange(mid, dtype=jnp.float32))
    args = timesteps.astype(jnp.float32)[:, None] * fs[None]
    emb = jnp.concatenate([jnp.cos(args), jnp.sin(args)], axis=-1)
    w1, b1, w2, b2 = params
    w1q = w1.astype(jnp.bfloat16).astype(jnp.float32)
    w2q = w2.astype(jnp.bfloat16).astype(jnp.float32)
    h = jnp.dot(emb, w1q, precision=jax.lax.Precision.HIGHEST) + b1
    h = h * jax.nn.sigmoid(h)
    return jnp.dot(h, w2q, precision=jax.lax.Precision.HIGHEST) + b2


if __name__ == "__main__":
    dim = 256       # lane-dense: mid = 128, dim multiple of 128
    N = 8
    key = jax.random.PRNGKey(0)
    kp, kt = jax.random.split(key)

    params = init_params(kp, dim)
    timesteps = jax.random.randint(kt, (N,), 0, 1000)  # one index per batch elem

    # tk/tn chosen automatically (single grid step at this size).
    out = timestep_embedding(timesteps, params, dim=dim)
    out = jax.block_until_ready(out)

    ref = _reference(timesteps, params, dim=dim)
    assert out.shape == (N, dim)
    err = float(jnp.max(jnp.abs(out - ref)))
    scale = float(jnp.max(jnp.abs(ref))) + 1e-6
    assert err / scale < 1e-2, f"mismatch vs reference: rel err {err / scale:.3e}"

    print("KERNEL_OK")
</pallas_src>

<mosaic_0001>
module attributes {stable_mosaic.version = 11 : i64} {
  func.func @_tsembed_kernel(%arg0: i32, %arg1: i32, %arg2: memref<8x1xf32, #tpu.memory_space<vmem>>, %arg3: memref<1x128xf32, #tpu.memory_space<vmem>>, %arg4: memref<128x256xbf16, #tpu.memory_space<vmem>>, %arg5: memref<128x256xbf16, #tpu.memory_space<vmem>>, %arg6: memref<1x256xf32, #tpu.memory_space<vmem>>, %arg7: memref<256x256xbf16, #tpu.memory_space<vmem>>, %arg8: memref<1x256xf32, #tpu.memory_space<vmem>>, %arg9: memref<8x256xf32, #tpu.memory_space<vmem>>, %arg10: memref<8x128xf32, #tpu.memory_space<vmem>>, %arg11: memref<8x128xf32, #tpu.memory_space<vmem>>) attributes {dimension_semantics = [#tpu.dimension_semantics<parallel>, #tpu.dimension_semantics<arbitrary>], iteration_bounds = array<i64: 1, 1>, scalar_prefetch = 0 : i64, scratch_operands = 2 : i64, tpu.core_type = #tpu.core_type<tc>, window_params = [{pipeline_mode = #tpu.pipeline_mode<synchronous>, transform_indices = @transform_0, window_bounds = array<i64: 8, 1>}, {pipeline_mode = #tpu.pipeline_mode<synchronous>, transform_indices = @transform_1, window_bounds = array<i64: 1, 128>}, {transform_indices = @transform_2, window_bounds = array<i64: 128, 256>}, {transform_indices = @transform_3, window_bounds = array<i64: 128, 256>}, {transform_indices = @transform_4, window_bounds = array<i64: 1, 256>}, {transform_indices = @transform_5, window_bounds = array<i64: 256, 256>}, {transform_indices = @transform_6, window_bounds = array<i64: 1, 256>}, {transform_indices = @transform_7, window_bounds = array<i64: 8, 256>}]} {
    %c0_i32 = arith.constant 0 : i32
    %0 = arith.cmpi eq, %arg1, %c0_i32 : i32
    %1 = arith.extui %0 : i1 to i32
    %c0_i32_0 = arith.constant 0 : i32
    %2 = arith.cmpi ne, %1, %c0_i32_0 : i32
    scf.if %2 {
      %c0_19 = arith.constant 0 : index
      %c0_20 = arith.constant 0 : index
      %25 = vector.load %arg2[%c0_19, %c0_20] : memref<8x1xf32, #tpu.memory_space<vmem>>, vector<8x1xf32>
      %c0_21 = arith.constant 0 : index
      %c0_22 = arith.constant 0 : index
      %26 = vector.load %arg3[%c0_21, %c0_22] : memref<1x128xf32, #tpu.memory_space<vmem>>, vector<1x128xf32>
      %27 = vector.broadcast %25 : vector<8x1xf32> to vector<8x128xf32>
      %28 = vector.broadcast %26 : vector<1x128xf32> to vector<8x128xf32>
      %29 = arith.mulf %27, %28 : vector<8x128xf32>
      %30 = math.cos %29 : vector<8x128xf32>
      %c0_23 = arith.constant 0 : index
      %c0_24 = arith.constant 0 : index
      %31 = vector.load %arg10[%c0_23, %c0_24] : memref<8x128xf32, #tpu.memory_space<vmem>>, vector<8x128xf32>
      tpu.vector_store %arg10[%c0_23, %c0_24], %30 {strides = array<i32>} : memref<8x128xf32, #tpu.memory_space<vmem>>, vector<8x128xf32>,
      %32 = math.sin %29 : vector<8x128xf32>
      %c0_25 = arith.constant 0 : index
      %c0_26 = arith.constant 0 : index
      %33 = vector.load %arg11[%c0_25, %c0_26] : memref<8x128xf32, #tpu.memory_space<vmem>>, vector<8x128xf32>
      tpu.vector_store %arg11[%c0_25, %c0_26], %32 {strides = array<i32>} : memref<8x128xf32, #tpu.memory_space<vmem>>, vector<8x128xf32>,
      %c0_27 = arith.constant 0 : index
      %c0_28 = arith.constant 0 : index
      %34 = vector.load %arg8[%c0_27, %c0_28] : memref<1x256xf32, #tpu.memory_space<vmem>>, vector<1x256xf32>
      %35 = vector.shape_cast %34 : vector<1x256xf32> to vector<1x256xf32>
      %36 = vector.broadcast %35 : vector<1x256xf32> to vector<8x256xf32>
      %c0_29 = arith.constant 0 : index
      %c0_30 = arith.constant 0 : index
      %37 = vector.load %arg9[%c0_29, %c0_30] : memref<8x256xf32, #tpu.memory_space<vmem>>, vector<8x256xf32>
      tpu.vector_store %arg9[%c0_29, %c0_30], %36 {strides = array<i32>} : memref<8x256xf32, #tpu.memory_space<vmem>>, vector<8x256xf32>,
    } else {
    }
    %c0 = arith.constant 0 : index
    %c0_1 = arith.constant 0 : index
    %3 = vector.load %arg10[%c0, %c0_1] : memref<8x128xf32, #tpu.memory_space<vmem>>, vector<8x128xf32>
    %c0_2 = arith.constant 0 : index
    %c0_3 = arith.constant 0 : index
    %4 = vector.load %arg4[%c0_2, %c0_3] : memref<128x256xbf16, #tpu.memory_space<vmem>>, vector<128x256xbf16>
    %cst = arith.constant dense<0.000000e+00> : vector<8x256xf32>
    %5 = tpu.matmul %3, %4, %cst {dimension_numbers = #tpu.dot_dimension_numbers<[1], [0], [0], [1], [0, 0, 1, 1], [], []>} : vector<8x128xf32>, vector<128x256xbf16>, vector<8x256xf32> -> vector<8x256xf32>
    %c0_4 = arith.constant 0 : index
    %c0_5 = arith.constant 0 : index
    %6 = vector.load %arg11[%c0_4, %c0_5] : memref<8x128xf32, #tpu.memory_space<vmem>>, vector<8x128xf32>
    %c0_6 = arith.constant 0 : index
    %c0_7 = arith.constant 0 : index
    %7 = vector.load %arg5[%c0_6, %c0_7] : memref<128x256xbf16, #tpu.memory_space<vmem>>, vector<128x256xbf16>
    %cst_8 = arith.constant dense<0.000000e+00> : vector<8x256xf32>
    %8 = tpu.matmul %6, %7, %cst_8 {dimension_numbers = #tpu.dot_dimension_numbers<[1], [0], [0], [1], [0, 0, 1, 1], [], []>} : vector<8x128xf32>, vector<128x256xbf16>, vector<8x256xf32> -> vector<8x256xf32>
    %9 = arith.addf %5, %8 : vector<8x256xf32>
    %c0_9 = arith.constant 0 : index
    %c0_10 = arith.constant 0 : index
    %10 = vector.load %arg6[%c0_9, %c0_10] : memref<1x256xf32, #tpu.memory_space<vmem>>, vector<1x256xf32>
    %11 = vector.broadcast %10 : vector<1x256xf32> to vector<8x256xf32>
    %12 = arith.addf %9, %11 : vector<8x256xf32>
    %13 = arith.negf %12 : vector<8x256xf32>
    %14 = math.exp %13 : vector<8x256xf32>
    %cst_11 = arith.constant 1.000000e+00 : f32
    %15 = vector.broadcast %cst_11 : f32 to vector<8x256xf32>
    %16 = arith.addf %15, %14 : vector<8x256xf32>
    %17 = arith.divf %15, %16 : vector<8x256xf32>
    %18 = arith.mulf %12, %17 : vector<8x256xf32>
    %c0_12 = arith.constant 0 : index
    %c0_13 = arith.constant 0 : index
    %19 = vector.load %arg9[%c0_12, %c0_13] : memref<8x256xf32, #tpu.memory_space<vmem>>, vector<8x256xf32>
    %20 = arith.truncf %18 : vector<8x256xf32> to vector<8x256xbf16>
    %c0_14 = arith.constant 0 : index
    %c0_15 = arith.constant 0 : index
    %21 = vector.load %arg7[%c0_14, %c0_15] : memref<256x256xbf16, #tpu.memory_space<vmem>>, vector<256x256xbf16>
    %cst_16 = arith.constant dense<0.000000e+00> : vector<8x256xf32>
    %22 = tpu.matmul %20, %21, %cst_16 {dimension_numbers = #tpu.dot_dimension_numbers<[1], [0], [0], [1], [0, 0, 1, 1], [], []>} : vector<8x256xbf16>, vector<256x256xbf16>, vector<8x256xf32> -> vector<8x256xf32>
    %23 = arith.addf %19, %22 : vector<8x256xf32>
    %c0_17 = arith.constant 0 : index
    %c0_18 = arith.constant 0 : index
    %24 = vector.load %arg9[%c0_17, %c0_18] : memref<8x256xf32, #tpu.memory_space<vmem>>, vector<8x256xf32>
    tpu.vector_store %arg9[%c0_17, %c0_18], %23 {strides = array<i32>} : memref<8x256xf32, #tpu.memory_space<vmem>>, vector<8x256xf32>,
    return
  }
  func.func @transform_0(%arg0: i32, %arg1: i32) -> (i32, i32) {
    %c0_i32 = arith.constant 0 : i32
    %c0_i32_0 = arith.constant 0 : i32
    %c0_i32_1 = arith.constant 0 : i32
    return %c0_i32, %c0_i32_0 : i32, i32
  }
  func.func @transform_1(%arg0: i32, %arg1: i32) -> (i32, i32) {
    %c0_i32 = arith.constant 0 : i32
    %c0_i32_0 = arith.constant 0 : i32
    %c0_i32_1 = arith.constant 0 : i32
    return %c0_i32, %c0_i32_0 : i32, i32
  }
  func.func @transform_2(%arg0: i32, %arg1: i32) -> (i32, i32) {
    %c0_i32 = arith.constant 0 : i32
    %c0_i32_0 = arith.constant 0 : i32
    return %c0_i32, %arg1 : i32, i32
  }
  func.func @transform_3(%arg0: i32, %arg1: i32) -> (i32, i32) {
    %c0_i32 = arith.constant 0 : i32
    %c0_i32_0 = arith.constant 0 : i32
    return %c0_i32, %arg1 : i32, i32
  }
  func.func @transform_4(%arg0: i32, %arg1: i32) -> (i32, i32) {
    %c0_i32 = arith.constant 0 : i32
    %c0_i32_0 = arith.constant 0 : i32
    return %c0_i32, %arg1 : i32, i32
  }
  func.func @transform_5(%arg0: i32, %arg1: i32) -> (i32, i32) {
    %c0_i32 = arith.constant 0 : i32
    return %arg1, %arg0 : i32, i32
  }
  func.func @transform_6(%arg0: i32, %arg1: i32) -> (i32, i32) {
    %c0_i32 = arith.constant 0 : i32
    %c0_i32_0 = arith.constant 0 : i32
    return %c0_i32, %arg0 : i32, i32
  }
  func.func @transform_7(%arg0: i32, %arg1: i32) -> (i32, i32) {
    %c0_i32 = arith.constant 0 : i32
    %c0_i32_0 = arith.constant 0 : i32
    return %c0_i32, %arg0 : i32, i32
  }
}

</mosaic_0001>

<bundles_post_ra>
// kernel: tpu_custom_call.1
= control target key start
LH: loop header
LB: loop body
LE: loop exit
PB: predicated region body
PF: predicated region fallthrough
CT: control target
= control target key end

     0   :  { %12 = vsyncpa [#allocation5], 0  ;;  %s1322_s0 = inlined_call_operand.vmem [shape: f32[8,1], index: 0, kind: input, shape index: {}]   ;;  %s1323_s1 = inlined_call_operand.vmem [shape: f32[1,128], index: 1, kind: input, shape index: {}]   ;;  %s1324_s2 = inlined_call_operand.hbm [shape: bf16[128,256], index: 2, kind: input, shape index: {}]   ;;  %s1325_s3 = inlined_call_operand.hbm [shape: bf16[128,256], index: 3, kind: input, shape index: {}]   ;;  %s1326_s4 = inlined_call_operand.vmem [shape: f32[1,256], index: 4, kind: input, shape index: {}]   ;;  %s1327_s5 = inlined_call_operand.hbm [shape: bf16[256,256], index: 5, kind: input, shape index: {}]   ;;  %s1328_s6 = inlined_call_operand.vmem [shape: f32[1,256], index: 6, kind: input, shape index: {}]   ;;  %s1329_s7 = inlined_call_operand.hbm [shape: f32[8,256], index: 7, kind: output, shape index: {}]  }
   0x1   :  { %13 = vsyncpa [#allocation8], 0 }
   0x2   :  { %14 = vsyncpa [#allocation6], 0  ;;  %s1165_s24 = smov [#allocation7]   ;;  %s1166_s26 = smov [#allocation4]  }
   0x3   :  { %s36_s25 = sshll.u32 %s1165_s24, 4  ;;  %s24_s27 = sshll.u32 %s1166_s26, 4  ;;  %s37_s25 = int_to_ptr.vmem [resolvable:$true] %s36_s25  ;;  %s1219_s27 = int_to_ptr.vmem [resolvable:$true] %s24_s27 }
   0x4   :  { %s1071_s30 = scalar_lea.hbm %s1325_s3, 2048 }
   0x5   :  { %p1072_p0 = scmp.ne.s32.totalorder %s1325_s3, %s1071_s30  ;;  %p1075_p1 = scmp.lt.u32.totalorder %s1071_s30, %s1325_s3 }
   0x7   :  { %p1077_p2 = pnand %p1075_p1, %p1072_p0 }
   0x9   :  { %1080 = shalt.err (!%p1077_p2)
}
   0xa   :  { %s1081_s12 = scalar_lea.vmem %s37_s25, 2048  ;;  %p1086_p4 = scmp.lt.s32.totalorder %s37_s25, %s37_s25 }
   0xb   :  { %p1082_p3 = scmp.ne.s32.totalorder %s37_s25, %s1081_s12  ;;  %p1087_p5 = scmp.lt.s32.totalorder %s1081_s12, %s1081_s12 }
   0xd   :  { %p1088_p6 = por %p1087_p5, %p1086_p4 }
   0xf   :  { %p1089_p7 = pnand %p1088_p6, %p1082_p3 }
  0x11   :  { %1092 = shalt.err (!%p1089_p7)
}
  0x12   :  { %s1167_s13 = smov 128   ;;  %s1168_s14 = smov 8  }
  0x13   :  { %42 = dma.hbm_to_vmem [thread:$0]  %s1325_s3, 2048, %s37_s25, [#allocation8], %s1167_s13, %s1167_s13, %s1168_s14  }
  0x14   :  { %s1093_s19 = scalar_lea.hbm %s1324_s2, 2048 }
  0x15   :  { %p1094_p8 = scmp.ne.s32.totalorder %s1324_s2, %s1093_s19  ;;  %p1097_p9 = scmp.lt.u32.totalorder %s1093_s19, %s1324_s2 }
  0x17   :  { %p1099_p10 = pnand %p1097_p9, %p1094_p8 }
  0x19   :  { %1102 = shalt.err (!%p1099_p10)
}
  0x1a   :  { %s1103_s24 = scalar_lea.vmem %s1219_s27, 2048  ;;  %p1108_p12 = scmp.lt.s32.totalorder %s1219_s27, %s1219_s27 }
  0x1b   :  { %p1104_p11 = scmp.ne.s32.totalorder %s1219_s27, %s1103_s24  ;;  %p1109_p13 = scmp.lt.s32.totalorder %s1103_s24, %s1103_s24 }
  0x1d   :  { %p1110_p0 = por %p1109_p13, %p1108_p12 }
  0x1f   :  { %p1111_p1 = pnand %p1110_p0, %p1104_p11 }
  0x21   :  { %1114 = shalt.err (!%p1111_p1)
}
  0x22   :  { %30 = dma.hbm_to_vmem [thread:$0]  %s1324_s2, 2048, %s1219_s27, [#allocation5], %s1167_s13, %s1167_s13, %s1168_s14  }
  0x23   :  { %s1169_s26 = smov [#allocation9]   ;;  %s1115_s8 = scalar_lea.hbm %s1327_s5, 4096 }
  0x24   :  { %s50_s28 = sshll.u32 %s1169_s26, 4  ;;  %p1116_p2 = scmp.ne.s32.totalorder %s1327_s5, %s1115_s8  ;;  %s51_s28 = int_to_ptr.vmem [resolvable:$true] %s50_s28 }
  0x25   :  { %p1119_p3 = scmp.lt.u32.totalorder %s1115_s8, %s1327_s5 }
  0x27   :  { %p1121_p4 = pnand %p1119_p3, %p1116_p2 }
  0x29   :  { %1124 = shalt.err (!%p1121_p4)
}
  0x2a   :  { %s1125_s15 = scalar_lea.vmem %s51_s28, 4096  ;;  %p1130_p6 = scmp.lt.s32.totalorder %s51_s28, %s51_s28 }
  0x2b   :  { %p1126_p5 = scmp.ne.s32.totalorder %s51_s28, %s1125_s15  ;;  %p1131_p7 = scmp.lt.s32.totalorder %s1125_s15, %s1125_s15 }
  0x2d   :  { %p1132_p8 = por %p1131_p7, %p1130_p6 }
  0x2f   :  { %p1133_p9 = pnand %p1132_p8, %p1126_p5 }
  0x31   :  { %1136 = shalt.err (!%p1133_p9)
}
  0x32   :  { %56 = dma.hbm_to_vmem [thread:$0]  %s1327_s5, 4096, %s51_s28, [#allocation8], %s1167_s13, %s1167_s13, %s1168_s14  }
  0x33   :  { %1159 = dma.done.wait [#allocation5], 2048  }
  0x34   :  { %1160 = vsyncadd [#allocation5], 4294965248 }
  0x35   :  { %1161 = dma.done.wait [#allocation8], 6144  }
  0x36   :  { %1162 = vsyncadd [#allocation8], 4294961152  ;;  %v1170_v0 = vmov 0   ;;  %v73_v1 = vld [vmem:[%s1322_s0] sm:$0xff]  ;;  %v966_v4 = vld [vmem:[#allocation7 + $0x14] ss:$8 sps:$4 sm:$0xff]  }
  0x37   :  { %962 = vset.pattern.permute.xlu0 %v1170_v0  ;;  %v963_v2 = vld [vmem:[#allocation7 + $0x4] ss:$8 sps:$4 sm:$0xff]   ;;  %v965_v3 = vld [vmem:[#allocation7] ss:$8 sps:$4 sm:$0xff]   ;;  %v968_v5 = vld [vmem:[#allocation7 + $0x10] ss:$8 sps:$4 sm:$0xff]  }
  0x38   :  { %77 = vperm.xlu0 %962, %v73_v1   ;;  %424 = vmatprep.subr.bf16.mxu0 %v963_v2  ;;  %v969_v6 = vld [vmem:[#allocation7 + $0x24] ss:$8 sps:$4 sm:$0xff]   ;;  %v971_v7 = vld [vmem:[#allocation7 + $0x20] ss:$8 sps:$4 sm:$0xff]   ;;  %v972_v8 = vld [vmem:[#allocation7 + $0x34] ss:$8 sps:$4 sm:$0xff]  }
  0x39   :  { %425 = vmatpush1.bf16.msra.mxu0 %v965_v3  ;;  %v974_v9 = vld [vmem:[#allocation7 + $0x30] ss:$8 sps:$4 sm:$0xff]   ;;  %v975_v10 = vld [vmem:[#allocation7 + $0x44] ss:$8 sps:$4 sm:$0xff]   ;;  %v977_v11 = vld [vmem:[#allocation7 + $0x40] ss:$8 sps:$4 sm:$0xff]  }
  0x3a   :  { %426 = vmatprep.subr.bf16.mxu0 %v966_v4  ;;  %v978_v12 = vld [vmem:[#allocation7 + $0x54] ss:$8 sps:$4 sm:$0xff]   ;;  %v1171_v13 = vmov 0.0   ;;  %v980_v14 = vld [vmem:[#allocation7 + $0x50] ss:$8 sps:$4 sm:$0xff]   ;;  %s1178_s18 = smov [#allocation10]  }
  0x3b   :  { %456 = vmatprep.mubr.f32.mxu0 %v1171_v13  ;;  %v981_v15 = vld [vmem:[#allocation7 + $0x64] ss:$8 sps:$4 sm:$0xff]   ;;  %v983_v16 = vld [vmem:[#allocation7 + $0x60] ss:$8 sps:$4 sm:$0xff]   ;;  %v984_v17 = vld [vmem:[#allocation7 + $0x74] ss:$8 sps:$4 sm:$0xff]  }
  0x3c   :  { %v986_v18 = vld [vmem:[#allocation7 + $0x70] ss:$8 sps:$4 sm:$0xff]   ;;  %v989_v19 = vld [vmem:[#allocation4 + $0x4] ss:$8 sps:$4 sm:$0xff]   ;;  %v1013_v21 = vld [vmem:[#allocation9] ss:$8 sps:$4 sm:$0xff]  }
  0x3d   :  { %427 = vmatpush1.bf16.msra.mxu0 %v968_v5  ;;  %v1011_v20 = vld [vmem:[#allocation9 + $0x4] ss:$8 sps:$4 sm:$0xff]   ;;  %v1014_v22 = vld [vmem:[#allocation9 + $0x14] ss:$8 sps:$4 sm:$0xff]   ;;  %v1016_v23 = vld [vmem:[#allocation9 + $0x10] ss:$8 sps:$4 sm:$0xff]  }
  0x3e   :  { %428 = vmatprep.subr.bf16.mxu0 %v969_v6  ;;  %806 = vmatprep.subr.bf16.mxu1 %v1011_v20  ;;  %v1017_v24 = vld [vmem:[#allocation9 + $0x24] ss:$8 sps:$4 sm:$0xff]   ;;  %v1019_v25 = vld [vmem:[#allocation9 + $0x20] ss:$8 sps:$4 sm:$0xff]   ;;  %v1020_v26 = vld [vmem:[#allocation9 + $0x34] ss:$8 sps:$4 sm:$0xff]  }
  0x3f   :  { %807 = vmatpush1.bf16.msra.mxu1 %v1013_v21  ;;  %v867_v27 = vld [vmem:[%s1323_s1] ss:$0 sm:$0xff]  ;;  %v1022_v29 = vld [vmem:[#allocation9 + $0x30] ss:$8 sps:$4 sm:$0xff]   ;;  %v1023_v31 = vld [vmem:[#allocation9 + $0x44] ss:$8 sps:$4 sm:$0xff]  }
  0x40   :  { %808 = vmatprep.subr.bf16.mxu1 %v1014_v22  ;;  %v1025_v33 = vld [vmem:[#allocation9 + $0x40] ss:$8 sps:$4 sm:$0xff]   ;;  %v1026_v35 = vld [vmem:[#allocation9 + $0x54] ss:$8 sps:$4 sm:$0xff]   ;;  %v1028_v37 = vld [vmem:[#allocation9 + $0x50] ss:$8 sps:$4 sm:$0xff]  }
  0x41   :  { %429 = vmatpush1.bf16.msra.mxu0 %v971_v7  ;;  %v1029_v39 = vld [vmem:[#allocation9 + $0x64] ss:$8 sps:$4 sm:$0xff]   ;;  %v1031_v42 = vld [vmem:[#allocation9 + $0x60] ss:$8 sps:$4 sm:$0xff]   ;;  %v1032_v44 = vld [vmem:[#allocation9 + $0x74] ss:$8 sps:$4 sm:$0xff]  }
  0x42   :  { %430 = vmatprep.subr.bf16.mxu0 %v972_v8  ;;  %v1172_v48 = vmov 683565275   ;;  %v1173_v50 = vmov 2475754826   ;;  %v1174_v53 = vmov 2131351028  }
  0x43   :  { %809 = vmatpush1.bf16.msra.mxu1 %v1016_v23  ;;  %v1175_v56 = vmov 2102212464   ;;  %v1176_v59 = vmov 920167782   ;;  %v1177_v62 = vmov 1326507024  }
  0x44   :  { %810 = vmatprep.subr.bf16.mxu1 %v1017_v24  ;;  %s857_s19 = sshll.u32 %s1178_s18, 4  ;;  %s858_s19 = int_to_ptr.vmem [resolvable:$true] %s857_s19 }
  0x45   :  { %431 = vmatpush1.bf16.msra.mxu0 %v974_v9  ;;  %s1137_s20 = scalar_lea.vmem %s858_s19, 256  ;;  %p1142_p11 = scmp.lt.s32.totalorder %s858_s19, %s858_s19 }
  0x46   :  { %432 = vmatprep.subr.bf16.mxu0 %v975_v10  ;;  %p1138_p10 = scmp.ne.s32.totalorder %s858_s19, %s1137_s20  ;;  %p1143_p12 = scmp.lt.s32.totalorder %s1137_s20, %s1137_s20 }
  0x47   :  { %811 = vmatpush1.bf16.msra.mxu1 %v1019_v25 }
  0x48   :  { %812 = vmatprep.subr.bf16.mxu1 %v1020_v26  ;;  %p1144_p13 = por %p1143_p12, %p1142_p11 }
  0x49   :  { %433 = vmatpush1.bf16.msra.mxu0 %v977_v11 }
  0x4a   :  { %434 = vmatprep.subr.bf16.mxu0 %v978_v12  ;;  %p1145_p0 = pnand %p1144_p13, %p1138_p10 }
  0x4b   :  { %813 = vmatpush1.bf16.msra.mxu1 %v1022_v29 }
  0x4c   :  { %814 = vmatprep.subr.bf16.mxu1 %v1023_v31 }
  0x4d   :  { %435 = vmatpush1.bf16.msra.mxu0 %v980_v14 }
  0x4e   :  { %436 = vmatprep.subr.bf16.mxu0 %v981_v15 }
  0x4f   :  { %815 = vmatpush1.bf16.msra.mxu1 %v1025_v33 }
  0x50   :  { %816 = vmatprep.subr.bf16.mxu1 %v1026_v35 }
  0x51   :  { %437 = vmatpush1.bf16.msra.mxu0 %v983_v16 }
  0x52   :  { %438 = vmatprep.subr.bf16.mxu0 %v984_v17 }
  0x53   :  { %817 = vmatpush1.bf16.msra.mxu1 %v1028_v37 }
  0x54   :  { %818 = vmatprep.subr.bf16.mxu1 %v1029_v39 }
  0x55   :  { %439 = vmatpush1.bf16.msra.mxu0 %v986_v18 }
  0x56   :  { %543 = vmatprep.subr.bf16.mxu0 %v989_v19 }
  0x57   :  { %819 = vmatpush1.bf16.msra.mxu1 %v1031_v42 }
  0x58   :  { %820 = vmatprep.subr.bf16.mxu1 %v1032_v44 }
  0xb7   :  { %v78_v28 = vpop.permute.xlu0 %77 }
  0xb8   :  { %v1278_v30 = vmul.f32 %v867_v27, %v78_v28 }
  0xba   :  { %v90_v32 = vand.u32 2139095040, %v1278_v30  ;;  %v87_v40 = vand.u32 2147483647, %v1278_v30  ;;  %vm89_vm7 = vcmp.lt.s32.totalorder %v1278_v30, 0  ;;  %vm179_vm12 = vweird.f32 %v1278_v30 }
  0xbc   :  { %v91_v34 = vshrl.u32 %v90_v32, 23  ;;  %v94_v45 = vand.u32 8388607, %v87_v40  ;;  %vm88_vm8 = vcmp.le.f32.partialorder %v87_v40, 0.7853982 }
  0xbe   :  { %v868_v36 = vadd.s32 4294967169, %v91_v34  ;;  %v95_v0 = vor.u32 8388608, %v94_v45 }
  0xc0   :  { %v97_v38 = vadd.s32 1, %v868_v36  ;;  %v135_v15 = vshll.u32 %v95_v0, 8 }
  0xc2   :  { %vm98_vm0 = vcmp.gt.s32.totalorder %v97_v38, 0 }
  0xc3   :  { %v99_v41 = vsel %vm98_vm0, %v97_v38, 0 }
  0xc4   :  { %v101_v43 = vand.u32 31, %v99_v41  ;;  %v100_v47 = vshrl.u32 %v99_v41, 5 }
  0xc6   :  { %v102_v46 = vsub.s32 32, %v101_v43  ;;  %v104_v49 = vshll.u32 %v1172_v48, %v101_v43  ;;  %v107_v51 = vshll.u32 %v1173_v50, %v101_v43  ;;  %v110_v55 = vshll.u32 %v1174_v53, %v101_v43 }
  0xc7   :  { %v113_v58 = vshll.u32 %v1175_v56, %v101_v43  ;;  %v116_v61 = vshll.u32 %v1176_v59, %v101_v43  ;;  %vm119_vm1 = vcmp.lt.s32.totalorder %v100_v47, 1  ;;  %vm122_vm2 = vcmp.lt.s32.totalorder %v100_v47, 4 }
  0xc8   :  { %v105_v52 = vshrl.u32 %v1173_v50, %v102_v46  ;;  %v108_v54 = vshrl.u32 %v1174_v53, %v102_v46  ;;  %v111_v57 = vshrl.u32 %v1175_v56, %v102_v46  ;;  %v114_v60 = vshrl.u32 %v1176_v59, %v102_v46 }
  0xc9   :  { %v117_v63 = vshrl.u32 %v1177_v62, %v102_v46  ;;  %v103_v9 = vshrl.u32 %v1172_v48, %v102_v46  ;;  %vm121_vm3 = vcmp.lt.s32.totalorder %v100_v47, 3  ;;  %vm120_vm4 = vcmp.lt.s32.totalorder %v100_v47, 2 }
  0xca   :  { %v106_v1 = vor.u32 %v105_v52, %v104_v49  ;;  %v109_v2 = vor.u32 %v108_v54, %v107_v51  ;;  %v112_v3 = vor.u32 %v111_v57, %v110_v55  ;;  %v115_v4 = vor.u32 %v114_v60, %v113_v58 }
  0xcb   :  { %v118_v5 = vor.u32 %v117_v63, %v116_v61 }
  0xcc   :  { %v124_v6 = vsel %vm122_vm2, %v112_v3, 2102212464  ;;  %v127_v7 = vsel %vm119_vm1, %v106_v1, %v109_v2  ;;  %v131_v8 = vsel %vm119_vm1, %v109_v2, %v112_v3  ;;  %v128_v10 = vsel %vm122_vm2, %v115_v4, 920167782 }
  0xcd   :  { %v132_v11 = vsel %vm122_vm2, %v118_v5, 1326507024  ;;  %v129_v12 = vsel %vm121_vm3, %v112_v3, %v128_v10  ;;  %v123_v16 = vsel %vm119_vm1, %v103_v9, %v106_v1  ;;  %v125_v17 = vsel %vm121_vm3, %v109_v2, %v124_v6  ;;  %v987_v1 = vld [vmem:[#allocation4] ss:$8 sps:$4 sm:$0xff]   ;;  %v992_v3 = vld [vmem:[#allocation4 + $0x14] ss:$8 sps:$4 sm:$0xff]  }
  0xce   :  { %v133_v14 = vsel %vm121_vm3, %v115_v4, %v132_v11  ;;  %v130_v18 = vsel %vm120_vm4, %v127_v7, %v129_v12  ;;  %v126_v24 = vsel %vm120_vm4, %v123_v16, %v125_v17  ;;  %v990_v5 = vld [vmem:[#allocation4 + $0x10] ss:$8 sps:$4 sm:$0xff]   ;;  %v995_v6 = vld [vmem:[#allocation4 + $0x24] ss:$8 sps:$4 sm:$0xff]   ;;  %v993_v7 = vld [vmem:[#allocation4 + $0x20] ss:$8 sps:$4 sm:$0xff]  }
  0xcf   :  { %v134_v19 = vsel %vm120_vm4, %v131_v8, %v133_v14  ;;  %v1287_v22 = vmul.u32.u64.low %v135_v15, %v130_v18  ;;  %v1288_v23 = vmul.u32.u64.high %v135_v15, %v130_v18, %v1287_v22  ;;  %v142_v26 = vmul.u32 %v135_v15, %v126_v24  ;;  %v998_v8 = vld [vmem:[#allocation4 + $0x34] ss:$8 sps:$4 sm:$0xff]   ;;  %v996_v9 = vld [vmem:[#allocation4 + $0x30] ss:$8 sps:$4 sm:$0xff]   ;;  %v1001_v10 = vld [vmem:[#allocation4 + $0x44] ss:$8 sps:$4 sm:$0xff]  }
  0xd0   :  { %v1284_v20 = vmul.u32.u64.low %v135_v15, %v134_v19  ;;  %v1285_v21 = vmul.u32.u64.high %v135_v15, %v134_v19, %v1284_v20  ;;  %v999_v11 = vld [vmem:[#allocation4 + $0x40] ss:$8 sps:$4 sm:$0xff]   ;;  %v1004_v12 = vld [vmem:[#allocation4 + $0x54] ss:$8 sps:$4 sm:$0xff]   ;;  %v1002_v14 = vld [vmem:[#allocation4 + $0x50] ss:$8 sps:$4 sm:$0xff]  }
  0xd1   :  { %v145_v25 = vadd.s32 1, %v1288_v23  ;;  %v1007_v15 = vld [vmem:[#allocation4 + $0x64] ss:$8 sps:$4 sm:$0xff]   ;;  %v1010_v17 = vld [vmem:[#allocation4 + $0x74] ss:$8 sps:$4 sm:$0xff]  }
  0xd2   :  { %vm144_vm5 = vc.u32 %v1285_v21, %v1287_v22  ;;  %v143_v39 = vadd.s32 %v1287_v22, %v1285_v21  ;;  %v1008_v18 = vld [vmem:[#allocation4 + $0x70] ss:$8 sps:$4 sm:$0xff]   ;;  %v1035_v24 = vld [vmem:[#allocation9 + $0x84] ss:$8 sps:$4 sm:$0xff]  }
  0xd3   :  { %v146_v27 = vsel %vm144_vm5, %v145_v25, %v1288_v23  ;;  %v1034_v23 = vld [vmem:[#allocation9 + $0x70] ss:$8 sps:$4 sm:$0xff]   ;;  %v1037_v25 = vld [vmem:[#allocation9 + $0x80] ss:$8 sps:$4 sm:$0xff]  }
  0xd4   :  { %v147_v28 = vadd.s32 %v146_v27, %v142_v26  ;;  %821 = vmatpush1.bf16.msra.mxu1 %v1034_v23  ;;  %v1038_v26 = vld [vmem:[#allocation9 + $0x94] ss:$8 sps:$4 sm:$0xff]   ;;  %v1040_v27 = vld [vmem:[#allocation9 + $0x90] ss:$8 sps:$4 sm:$0xff]  }
  0xd5   :  { %822 = vmatprep.subr.bf16.mxu1 %v1035_v24 }
  0xd6   :  { %v148_v29 = vadd.s32 536870912, %v147_v28 }
  0xd8   :  { %v149_v31 = vshrl.u32 %v148_v29, 30  ;;  %823 = vmatpush1.bf16.msra.mxu1 %v1037_v25  ;;  %v1043_v29 = vld [vmem:[#allocation9 + $0xa0] ss:$8 sps:$4 sm:$0xff]  }
  0xd9   :  { %824 = vmatprep.subr.bf16.mxu1 %v1038_v26 }
  0xda   :  { %v150_v32 = vshll.u32 %v149_v31, 30  ;;  %v173_v52 = vsub.s32 4, %v149_v31 }
  0xdc   :  { %v151_v33 = vsub.s32 %v147_v28, %v150_v32  ;;  %v174_v55 = vsel %vm89_vm7, %v173_v52, %v149_v31  ;;  %825 = vmatpush1.bf16.msra.mxu1 %v1040_v27  ;;  %v1041_v28 = vld [vmem:[#allocation9 + $0xa4] ss:$8 sps:$4 sm:$0xff]   ;;  %v1044_v31 = vld [vmem:[#allocation9 + $0xb4] ss:$8 sps:$4 sm:$0xff]   ;;  %v1046_v32 = vld [vmem:[#allocation9 + $0xb0] ss:$8 sps:$4 sm:$0xff]  }
  0xdd   :  { %v176_v57 = vsel %vm88_vm8, 0, %v174_v55  ;;  %826 = vmatprep.subr.bf16.mxu1 %v1041_v28 }
  0xde   :  { %v153_v34 = vsub.s32 0, %v151_v33  ;;  %v284_v58 = vadd.s32 3, %v176_v57  ;;  %v180_v16 = vand.u32 3, %v176_v57 }
  0xe0   :  { %v869_v35 = vmin.u32 %v153_v34, %v151_v33  ;;  %v285_v59 = vand.u32 3, %v284_v58  ;;  %vm182_vm13 = vcmp.eq.s32.totalorder %v180_v16, 0  ;;  %vm185_vm14 = vcmp.eq.s32.totalorder %v180_v16, 2  ;;  %827 = vmatpush1.bf16.msra.mxu1 %v1043_v29  ;;  %v1050_v34 = vld [vmem:[#allocation9 + $0xd4] ss:$8 sps:$4 sm:$0xff]  }
  0xe1   :  { %vm181_vm15 = vcmp.lt.s32.totalorder %v180_v16, 2  ;;  %828 = vmatprep.subr.bf16.mxu1 %v1044_v31 }
  0xe2   :  { %v155_v36 = vclz %v869_v35  ;;  %vm290_vm9 = vcmp.eq.s32.totalorder %v285_v59, 2  ;;  %vm287_vm10 = vcmp.eq.s32.totalorder %v285_v59, 0  ;;  %vm286_vm11 = vcmp.lt.s32.totalorder %v285_v59, 2  ;;  %v1052_v35 = vld [vmem:[#allocation9 + $0xd0] ss:$8 sps:$4 sm:$0xff]  }
  0xe4   :  { %v870_v37 = vadd.s32 4294967294, %v155_v36  ;;  %829 = vmatpush1.bf16.msra.mxu1 %v1046_v32  ;;  %v1053_v36 = vld [vmem:[#allocation9 + $0xe4] ss:$8 sps:$4 sm:$0xff]  }
  0xe6   :  { %vm871_vm6 = vcmp.lt.s32.totalorder %v870_v37, 0 }
  0xe7   :  { %v158_v38 = vsel %vm871_vm6, 0, %v870_v37  ;;  %v1055_v37 = vld [vmem:[#allocation9 + $0xe0] ss:$8 sps:$4 sm:$0xff]  }
  0xe8   :  { %v159_v41 = vsub.s32 32, %v158_v38  ;;  %v163_v42 = vsub.s32 4294967266, %v158_v38  ;;  %v160_v43 = vshll.u32 %v151_v33, %v158_v38  ;;  %v1049_v33 = vld [vmem:[#allocation9 + $0xc0] ss:$8 sps:$4 sm:$0xff]   ;;  %v1056_v38 = vld [vmem:[#allocation9 + $0xf4] ss:$8 sps:$4 sm:$0xff]  }
  0xea   :  { %v161_v44 = vshrl.u32 %v143_v39, %v159_v41  ;;  %v164_v45 = vadd.s32 127, %v163_v42  ;;  %v1058_v39 = vld [vmem:[#allocation9 + $0xf0] ss:$8 sps:$4 sm:$0xff]   ;;  %v298_v41 = vlaneseq }
  0xec   :  { %v162_v46 = vor.u32 %v161_v44, %v160_v43  ;;  %v165_v47 = vshll.u32 %v164_v45, 23  ;;  %v299_v42 = vshrl.u32 %v298_v41, 7  ;;  %v582_v44 = vld [vmem:[%s1326_s4] sm:$0x3] }
  0xee   :  { %v166_v48 = vor.u32 4788187, %v165_v47  ;;  %v169_v50 = vcvt.s32.f32 %v162_v46  ;;  %v300_v43 = vsub.s32 0, %v299_v42  ;;  %v304_v45 = vsub.s32 1, %v299_v42 }
  0xf0   :  { %v167_v49 = vand.u32 2147483647, %v166_v48  ;;  %v587_v46 = vrot.slane %v582_v44, %v300_v43  ;;  %v591_v47 = vrot.slane %v582_v44, %v304_v45 }
  0xf2   :  { %v170_v51 = vmul.f32 %v169_v50, %v167_v49 }
  0xf4   :  { %v171_v53 = vxor.u32 2147483648, %v170_v51 }
  0xf6   :  { %v172_v54 = vsel %vm89_vm7, %v171_v53, %v170_v51 }
  0xf7   :  { %v175_v56 = vsel %vm88_vm8, %v1278_v30, %v172_v54  ;;  %v1047_v30 = vld [vmem:[#allocation9 + $0xc4] ss:$8 sps:$4 sm:$0xff]  }
  0xf8   :  { %1059 = vcosq.f32 %v175_v56  ;;  %830 = vmatprep.subr.bf16.mxu1 %v1047_v30 }
  0xf9   :  { %1061 = vsinq.f32 %v175_v56  ;;  %831 = vmatpush1.bf16.msra.mxu1 %v1049_v33 }
  0xfa   :  { %832 = vmatprep.subr.bf16.mxu1 %v1050_v34 }
  0xfd   :  { %833 = vmatpush1.bf16.msra.mxu1 %v1052_v35 }
  0xfe   :  { %834 = vmatprep.subr.bf16.mxu1 %v1053_v36 }
 0x101   :  { %835 = vmatpush1.bf16.msra.mxu1 %v1055_v37 }
 0x102   :  { %v1060_v60 = vpop.eup %1059  ;;  %836 = vmatprep.subr.bf16.mxu1 %v1056_v38 }
 0x103   :  { %v1062_v61 = vpop.eup %1061  ;;  %v186_v62 = vxor.u32 2147483648, %v1060_v60 }
 0x104   :  { %v183_v63 = vxor.u32 2147483648, %v1062_v61 }
 0x105   :  { %v292_v0 = vsel %vm290_vm9, %v186_v62, %v1062_v61  ;;  %v187_v20 = vsel %vm185_vm14, %v186_v62, %v1062_v61  ;;  %837 = vmatpush1.bf16.msra.mxu1 %v1058_v39 }
 0x106   :  { %v289_v2 = vsel %vm287_vm10, %v1060_v60, %v183_v63  ;;  %v184_v19 = vsel %vm182_vm13, %v1060_v60, %v183_v63 }
 0x107   :  { %v293_v40 = vsel %vm286_vm11, %v289_v2, %v292_v0  ;;  %v188_v21 = vsel %vm181_vm15, %v184_v19, %v187_v20  ;;  %v296_v0 = vld [vmem:[%s1328_s6] sm:$0x3] }
 0x108   :  { %v294_v4 = vsel %vm179_vm12, nan, %v293_v40  ;;  %v189_v22 = vsel %vm179_vm12, nan, %v188_v21  ;;  %v305_v2 = vrot.slane %v296_v0, %v304_v45 }
 0x109   :  { %457 = vmatmul.mubr.f32.vlgmr.msra.gmra.mrb[0].mxu0 %v294_v4 }
 0x10a   :  { %544 = vmatpush1.bf16.msra.mxu0 %v987_v1  ;;  %575 = vmatprep.mubr.f32.mxu0 %v1171_v13  ;;  %v1005_v13 = vld [vmem:[#allocation4 + $0x60] ss:$8 sps:$4 sm:$0xff]   ;;  %v301_v1 = vrot.slane %v296_v0, %v300_v43 }
 0x10b   :  { %545 = vmatprep.subr.bf16.mxu0 %v992_v3 }
 0x10e   :  { %546 = vmatpush1.bf16.msra.mxu0 %v990_v5 }
 0x10f   :  { %547 = vmatprep.subr.bf16.mxu0 %v995_v6 }
 0x112   :  { %548 = vmatpush1.bf16.msra.mxu0 %v993_v7 }
 0x113   :  { %549 = vmatprep.subr.bf16.mxu0 %v998_v8 }
 0x116   :  { %550 = vmatpush1.bf16.msra.mxu0 %v996_v9 }
 0x117   :  { %551 = vmatprep.subr.bf16.mxu0 %v1001_v10 }
 0x11a   :  { %552 = vmatpush1.bf16.msra.mxu0 %v999_v11 }
 0x11b   :  { %553 = vmatprep.subr.bf16.mxu0 %v1004_v12 }
 0x11e   :  { %554 = vmatpush1.bf16.msra.mxu0 %v1002_v14 }
 0x11f   :  { %555 = vmatprep.subr.bf16.mxu0 %v1007_v15 }
 0x122   :  { %556 = vmatpush1.bf16.msra.mxu0 %v1005_v13 }
 0x123   :  { %557 = vmatprep.subr.bf16.mxu0 %v1010_v17 }
 0x126   :  { %558 = vmatpush1.bf16.msra.mxu0 %v1008_v18 }
 0x129   :  { %576 = vmatmul.mubr.f32.vlgmr.msra.gmra.mrb[0].mxu0 %v189_v22 }
 0x1fc   :  { %v577_v48 = vpop.f32.mrb[0].mxu0 }
 0x1fd   :  { %v594_v49 = vadd.f32 %v587_v46, %v577_v48  ;;  %v579_v50 = vpop.f32.mrb[1].mxu0 }
 0x1fe   :  { %v595_v51 = vadd.f32 %v591_v47, %v579_v50 }
 0x1ff   :  { %v908_v52 = vmul.f32 -1.442695, %v594_v49 }
 0x200   :  { %v909_v53 = vmul.f32 -1.442695, %v595_v51 }
 0x201   :  { %1063 = vpow2.f32 %v908_v52 }
 0x202   :  { %1065 = vpow2.f32 %v909_v53 }
 0x20b   :  { %v1064_v54 = vpop.eup %1063 }
 0x20c   :  { %v1066_v55 = vpop.eup %1065  ;;  %v602_v56 = vadd.f32 1.0, %v1064_v54 }
 0x20d   :  { %v603_v57 = vadd.f32 1.0, %v1066_v55 }
 0x20e   :  { %1067 = vrcp.f32 %v602_v56 }
 0x20f   :  { %1069 = vrcp.f32 %v603_v57 }
 0x218   :  { %v1068_v58 = vpop.eup %1067 }
 0x219   :  { %v1070_v59 = vpop.eup %1069  ;;  %v608_v60 = vmul.f32 %v1068_v58, %v594_v49 }
 0x21a   :  { %v609_v61 = vmul.f32 %v1070_v59, %v595_v51 }
 0x21b   :  { %v612_v63 = vpack.c.bf16 %v608_v60, %v608_v60 }
 0x21c   :  { %v613_v62 = vpack.c.bf16 %v609_v61, %v609_v61 }
 0x21e   :  { %838 = vmatprep.mubr.bf16.mxu1 %v613_v62 }
 0x21f   :  { %839 = vmatmul.mubr.bf16.vlgmr.msra.gmra.mrb[0].mxu1 %v612_v63 }
 0x2f2   :  { %v840_v40 = vpop.f32.mrb[0].mxu1 }
 0x2f3   :  { %v847_v3 = vadd.f32 %v840_v40, %v301_v1  ;;  %v842_v4 = vpop.f32.mrb[1].mxu1 }
 0x2f4   :  { %v848_v5 = vadd.f32 %v842_v4, %v305_v2  ;;  %v844_v6 = vpop.f32.mrb[2].mxu1 }
 0x2f5   :  { %849 = vst [vmem:[#allocation10] sm:$0xff] %v847_v3  ;;  %v845_v7 = vpop.f32.mrb[3].mxu1 }
 0x2f6   :  { %850 = vst [vmem:[#allocation10 + $0x8] sm:$0xff] %v848_v5 }
 0x2f7   :  { %1148 = shalt.err (!%p1145_p0)
}
 0x2f8   :  { %s1149_s22 = scalar_lea.hbm %s1329_s7, 256 }
 0x2f9   :  { %p1150_p1 = scmp.ne.s32.totalorder %s1329_s7, %s1149_s22  ;;  %p1153_p2 = scmp.lt.u32.totalorder %s1149_s22, %s1329_s7 }
 0x2fb   :  { %p1155_p3 = pnand %p1153_p2, %p1150_p1 }
 0x2fd   :  { %1158 = shalt.err (!%p1155_p3)
}
 0x2fe   :  { %860 = dma.vmem_to_hbm [thread:$0]  %s858_s19, 256, %s1329_s7, [#allocation6]  }
 0x2ff   :  { %1163 = dma.done.wait [#allocation6], 256  }
 0x300   :  { %1164 = vsyncadd [#allocation6], 4294967040 }
 0x301   :  { %864 = vsyncpa [#allocation5], 1 }
 0x302   :  { %865 = vsyncpa [#allocation8], 1 }
 0x303   :  { %866 = vsyncpa [#allocation6], 1 }

</bundles_post_ra>
